<compile_context>
chip_gen: v7x
topology: tpu7x:2x2x1
jax: 0.10.0
libtpu: 0.0.40
codegen_flags: <defaults>
</compile_context>

<pallas_src>
import math

import jax
import jax.numpy as jnp
from jax.experimental import pallas as pl
from jax.experimental.pallas import tpu as pltpu


def biaffine_kernel(a_ref, u_ref, bt_ref, o_ref, tmp_ref):
    """Grid cell (i, j): o[i, j] = (a[i] @ U) @ bT[:, j].

    Grid is (M-tiles, N-tiles) with the N axis innermost, so
    tmp = a_tile @ U is computed only at j == 0 and reused for every N-tile
    of the current M-tile.  tmp is stored directly in the compute dtype the
    second matmul consumes, so the inner loop does no per-step casting.
    """
    @pl.when(pl.program_id(1) == 0)
    def _():
        tmp_ref[...] = jnp.dot(
            a_ref[...], u_ref[...], preferred_element_type=jnp.float32
        ).astype(tmp_ref.dtype)

    # Plain (non-transposed) MXU matmul: bT block is (d, tn).
    o_ref[...] = jnp.dot(
        tmp_ref[...], bt_ref[...], preferred_element_type=jnp.float32
    ).astype(o_ref.dtype)


def _pick_tile(dim, preferred):
    # Full-extent block for small dims (always layout-legal and bounded in
    # size by `preferred`); fixed aligned tile + cdiv edge-masking otherwise.
    # Never requests a block larger than max(dim, preferred), so VMEM stays
    # bounded for arbitrary (unaligned) shapes.
    return dim if dim <= preferred else preferred


def _prefer_even_m_tiles(M, tm):
    # v7x shards the "parallel" M axis across 2 TensorCores: prefer an even
    # number of M-tiles so neither core idles.  Only shrink tm moderately
    # (>= tm/2) and keep it a multiple of 8 (sublane alignment).
    if M <= tm or pl.cdiv(M, tm) % 2 == 0:
        return tm
    for cand in range(tm - 8, tm // 2 - 1, -8):
        if pl.cdiv(M, cand) % 2 == 0:
            return cand
    return tm


def biaffine(a, b, U, *, tm_pref=512, tn_pref=512,
             compute_dtype=jnp.bfloat16, out_dtype=None):
    """out = a @ U @ b.T  with a:(M, d), b:(N, d), U:(d, d).

    Matmuls run on the MXU in `compute_dtype` (bfloat16 by default: full MXU
    rate on all TPU generations, half the HBM bytes) with f32 accumulation.
    Pass compute_dtype=jnp.float32 for f32-faithful semantics.
    """
    M, d = a.shape
    N, d2 = b.shape
    assert d == d2 == U.shape[0] == U.shape[1]
    out_dtype = a.dtype if out_dtype is None else out_dtype

    # Cast once in XLA; pre-transpose b so the kernel's second matmul is a
    # plain non-transposed MXU dot (no in-kernel XLU transpose of the
    # streamed tile).  Matches PyTorch's b.transpose(0, 1).
    a_c = a.astype(compute_dtype)
    u_c = U.astype(compute_dtype)
    bt_c = b.astype(compute_dtype).T                      # (d, N)

    tm = _prefer_even_m_tiles(M, _pick_tile(M, tm_pref))
    tn = _pick_tile(N, tn_pref)
    grid = (pl.cdiv(M, tm), pl.cdiv(N, tn))

    cb = jnp.dtype(compute_dtype).itemsize
    ob = jnp.dtype(out_dtype).itemsize

    # VMEM budget: double-buffered a / U / bT blocks + double-buffered out
    # tile + tmp scratch.  Defaults (tm=tn=512, bf16) stay well inside v7x's
    # 64 MiB physical VMEM for d <= 2048; set the scoped limit explicitly
    # since v5e's default is only 16 MiB.
    vmem_bytes = ((2 * tm * d + 2 * d * d + 2 * tn * d + tm * d) * cb
                  + 2 * tm * tn * ob)
    vmem_limit = int(min(max(2 * vmem_bytes, 32 * 1024 * 1024),
                         128 * 1024 * 1024))
    # TODO(synk): for very large d (>= ~4096) single-buffer the resident U
    # block (pipeline_mode=pl.Buffered(1)) or hoist tmp = a @ U into XLA with
    # a k grid axis so U's footprint stays inside v7x's 64 MiB VMEM.

    # b^T is re-streamed once per M-tile: count those re-reads so XLA sees
    # the kernel's true HBM traffic.
    cost = pl.CostEstimate(
        flops=2 * M * d * d + 2 * M * N * d,
        transcendentals=0,
        bytes_accessed=cb * (M * d + d * d + grid[0] * N * d) + ob * M * N,
    )

    return pl.pallas_call(
        biaffine_kernel,
        out_shape=jax.ShapeDtypeStruct((M, N), out_dtype),
        grid=grid,
        in_specs=[
            # a tile: varies with i only -> fetched once per M-tile.
            pl.BlockSpec((tm, d), lambda i, j: (i, 0)),
            # U: constant block index -> DMA'd once, stays VMEM-resident.
            pl.BlockSpec((d, d), lambda i, j: (0, 0)),
            # b^T tile: the only block that changes every inner step.
            pl.BlockSpec((d, tn), lambda i, j: (0, j)),
        ],
        out_specs=pl.BlockSpec((tm, tn), lambda i, j: (i, j)),
        # Cached a_tile @ U, kept in the dtype the second matmul consumes.
        scratch_shapes=[pltpu.VMEM((tm, d), compute_dtype)],
        compiler_params=pltpu.CompilerParams(
            dimension_semantics=("parallel", "arbitrary"),
            vmem_limit_bytes=vmem_limit,
        ),
        cost_estimate=cost,
    )(a_c, u_c, bt_c)


def xavier_uniform(key, shape, dtype=jnp.float32):
    # Matches torch.nn.init.xavier_uniform_ for a 2-D weight.
    fan_in, fan_out = shape[1], shape[0]
    bound = math.sqrt(6.0 / (fan_in + fan_out))
    return jax.random.uniform(key, shape, dtype, minval=-bound, maxval=bound)


if __name__ == "__main__":
    key = jax.random.PRNGKey(0)
    k_u, k_a, k_b = jax.random.split(key, 3)

    # Small shapes consistent with the module's forward (seq lens 8, d_model 32).
    # f32 compute path: faithful to the PyTorch f32 reference.
    d_model, M, N = 32, 8, 8
    U = xavier_uniform(k_u, (d_model, d_model))
    a = jax.random.normal(k_a, (M, d_model), dtype=jnp.float32)
    b = jax.random.normal(k_b, (N, d_model), dtype=jnp.float32)

    out = jax.block_until_ready(biaffine(a, b, U, compute_dtype=jnp.float32))
    ref = a @ U @ b.T
    assert out.shape == (M, N)
    assert jnp.allclose(out, ref, atol=1e-4, rtol=1e-4)

    # Larger, tile-aligned shapes: default bf16 MXU path, multi-N-tile grid
    # (tmp = a_tile @ U cached once per M-tile, reused across N-tiles).
    k_u2, k_a2, k_b2 = jax.random.split(jax.random.PRNGKey(1), 3)
    d2, M2, N2 = 256, 512, 1024
    U2 = xavier_uniform(k_u2, (d2, d2))
    a2 = jax.random.normal(k_a2, (M2, d2), dtype=jnp.float32)
    b2 = jax.random.normal(k_b2, (N2, d2), dtype=jnp.float32)
    out2 = jax.block_until_ready(biaffine(a2, b2, U2))
    ref2 = a2 @ U2 @ b2.T
    assert out2.shape == (M2, N2)
    assert jnp.allclose(out2, ref2, atol=0.5, rtol=0.05)

    # Unaligned shapes: exercises the cdiv grid with masked edge blocks and
    # the multi-M-tile path (tmp recomputed at each j == 0).
    k_u3, k_a3, k_b3 = jax.random.split(jax.random.PRNGKey(2), 3)
    d3, M3, N3 = 128, 1100, 900
    U3 = xavier_uniform(k_u3, (d3, d3))
    a3 = jax.random.normal(k_a3, (M3, d3), dtype=jnp.float32)
    b3 = jax.random.normal(k_b3, (N3, d3), dtype=jnp.float32)
    out3 = jax.block_until_ready(biaffine(a3, b3, U3))
    ref3 = a3 @ U3 @ b3.T
    assert out3.shape == (M3, N3)
    assert jnp.allclose(out3, ref3, atol=0.5, rtol=0.05)

    print("KERNEL_OK")
</pallas_src>

<mosaic_0001>
module attributes {stable_mosaic.version = 11 : i64} {
  func.func @biaffine_kernel(%arg0: i32, %arg1: i32, %arg2: memref<8x32xf32, #tpu.memory_space<vmem>>, %arg3: memref<32x32xf32, #tpu.memory_space<vmem>>, %arg4: memref<32x8xf32, #tpu.memory_space<vmem>>, %arg5: memref<8x8xf32, #tpu.memory_space<vmem>>, %arg6: memref<8x32xf32, #tpu.memory_space<vmem>>) attributes {dimension_semantics = [#tpu.dimension_semantics<parallel>, #tpu.dimension_semantics<arbitrary>], iteration_bounds = array<i64: 1, 1>, scalar_prefetch = 0 : i64, scratch_operands = 1 : i64, tpu.core_type = #tpu.core_type<tc>, window_params = [{transform_indices = @transform_0, window_bounds = array<i64: 8, 32>}, {pipeline_mode = #tpu.pipeline_mode<synchronous>, transform_indices = @transform_1, window_bounds = array<i64: 32, 32>}, {transform_indices = @transform_2, window_bounds = array<i64: 32, 8>}, {transform_indices = @transform_3, window_bounds = array<i64: 8, 8>}]} {
    %c0_i32 = arith.constant 0 : i32
    %0 = arith.cmpi eq, %arg1, %c0_i32 : i32
    %1 = arith.extui %0 : i1 to i32
    %c0_i32_0 = arith.constant 0 : i32
    %2 = arith.cmpi ne, %1, %c0_i32_0 : i32
    scf.if %2 {
      %c0_6 = arith.constant 0 : index
      %c0_7 = arith.constant 0 : index
      %7 = vector.load %arg2[%c0_6, %c0_7] : memref<8x32xf32, #tpu.memory_space<vmem>>, vector<8x32xf32>
      %c0_8 = arith.constant 0 : index
      %c0_9 = arith.constant 0 : index
      %8 = vector.load %arg3[%c0_8, %c0_9] : memref<32x32xf32, #tpu.memory_space<vmem>>, vector<32x32xf32>
      %cst_10 = arith.constant dense<0.000000e+00> : vector<8x32xf32>
      %9 = tpu.matmul %7, %8, %cst_10 {dimension_numbers = #tpu.dot_dimension_numbers<[1], [0], [0], [1], [0, 0, 1, 1], [], []>} : vector<8x32xf32>, vector<32x32xf32>, vector<8x32xf32> -> vector<8x32xf32>
      %c0_11 = arith.constant 0 : index
      %c0_12 = arith.constant 0 : index
      %10 = vector.load %arg6[%c0_11, %c0_12] : memref<8x32xf32, #tpu.memory_space<vmem>>, vector<8x32xf32>
      tpu.vector_store %arg6[%c0_11, %c0_12], %9 {strides = array<i32>} : memref<8x32xf32, #tpu.memory_space<vmem>>, vector<8x32xf32>,
    } else {
    }
    %c0 = arith.constant 0 : index
    %c0_1 = arith.constant 0 : index
    %3 = vector.load %arg6[%c0, %c0_1] : memref<8x32xf32, #tpu.memory_space<vmem>>, vector<8x32xf32>
    %c0_2 = arith.constant 0 : index
    %c0_3 = arith.constant 0 : index
    %4 = vector.load %arg4[%c0_2, %c0_3] : memref<32x8xf32, #tpu.memory_space<vmem>>, vector<32x8xf32>
    %cst = arith.constant dense<0.000000e+00> : vector<8x8xf32>
    %5 = tpu.matmul %3, %4, %cst {dimension_numbers = #tpu.dot_dimension_numbers<[1], [0], [0], [1], [0, 0, 1, 1], [], []>} : vector<8x32xf32>, vector<32x8xf32>, vector<8x8xf32> -> vector<8x8xf32>
    %c0_4 = arith.constant 0 : index
    %c0_5 = arith.constant 0 : index
    %6 = vector.load %arg5[%c0_4, %c0_5] : memref<8x8xf32, #tpu.memory_space<vmem>>, vector<8x8xf32>
    tpu.vector_store %arg5[%c0_4, %c0_5], %5 {strides = array<i32>} : memref<8x8xf32, #tpu.memory_space<vmem>>, vector<8x8xf32>,
    return
  }
  func.func @transform_0(%arg0: i32, %arg1: i32) -> (i32, i32) {
    %c0_i32 = arith.constant 0 : i32
    %c0_i32_0 = arith.constant 0 : i32
    return %arg0, %c0_i32 : i32, i32
  }
  func.func @transform_1(%arg0: i32, %arg1: i32) -> (i32, i32) {
    %c0_i32 = arith.constant 0 : i32
    %c0_i32_0 = arith.constant 0 : i32
    %c0_i32_1 = arith.constant 0 : i32
    return %c0_i32, %c0_i32_0 : i32, i32
  }
  func.func @transform_2(%arg0: i32, %arg1: i32) -> (i32, i32) {
    %c0_i32 = arith.constant 0 : i32
    %c0_i32_0 = arith.constant 0 : i32
    return %c0_i32, %arg1 : i32, i32
  }
  func.func @transform_3(%arg0: i32, %arg1: i32) -> (i32, i32) {
    %c0_i32 = arith.constant 0 : i32
    return %arg0, %arg1 : i32, i32
  }
}

</mosaic_0001>

<bundles_post_ra>
// kernel: tpu_custom_call.1
= control target key start
LH: loop header
LB: loop body
LE: loop exit
PB: predicated region body
PF: predicated region fallthrough
CT: control target
= control target key end

     0   :  { %v268_v3 = vmov 0.0|0.0   ;;  %vm269_vm0 = vmmov 0   ;;  %v270_v6 = vmov 0.0   ;;  %s331_s0 = inlined_call_operand.vmem [shape: f32[8,32], index: 0, kind: input, shape index: {}]   ;;  %s332_s1 = inlined_call_operand.vmem [shape: f32[32,32], index: 1, kind: input, shape index: {}]   ;;  %s333_s2 = inlined_call_operand.vmem [shape: f32[32,8], index: 2, kind: input, shape index: {}]   ;;  %s334_s3 = inlined_call_operand.hbm [shape: f32[8,8], index: 3, kind: output, shape index: {}]  }
   0x1   :  { %v20_v0 = vld [vmem:[%s332_s1] sm:$0xff]  ;;  %v21_v1 = vld [vmem:[%s332_s1 + $0x8] sm:$0xff]  ;;  %v22_v2 = vld [vmem:[%s332_s1 + $0x10] sm:$0xff]  ;;  %228 = vmatprep.subr.bf16.mxu0 %v268_v3  ;;  %214 = vmatprep.mubr.msk.f32.mxu0 %vm269_vm0, %v270_v6 }
   0x2   :  { %v229_v4 = vpack.c.bf16 %v21_v1, %v20_v0  ;;  %v23_v5 = vld [vmem:[%s332_s1 + $0x18] sm:$0xff] }
   0x3   :  { %8 = vsyncpa [#allocation4], 0  ;;  %234 = vmatprep.subr.bf16.mxu1 %v268_v3  ;;  %225 = vmatprep.mubr.msk.f32.mxu1 %vm269_vm0, %v270_v6  ;;  %v232_v7 = vpack.c.bf16 %v23_v5, %v22_v2  ;;  %v19_v8 = vld [vmem:[%s331_s0] sm:$0xff]  ;;  %vm24_vm1 = vcmask 261120   ;;  %v101_v10 = vld [vmem:[%s333_s2 + $0x8] sm:$0xff]  ;;  %s271_s0 = smov [#allocation3]  }
   0x4   :  { %230 = vmatpush3.bf16.msra.mxu0 %v229_v4  ;;  %v100_v9 = vld [vmem:[%s333_s2] sm:$0xff]  ;;  %v102_v12 = vld [vmem:[%s333_s2 + $0x10] sm:$0xff]  ;;  %v103_v13 = vld [vmem:[%s333_s2 + $0x18] sm:$0xff]  ;;  %s186_s29 = sshll.u32 %s271_s0, 4  ;;  %vm178_vm2 = vcmask 64512   ;;  %s187_s29 = int_to_ptr.vmem [resolvable:$true] %s186_s29 }
   0x5   :  { %231 = vmatprep.subr.bf16.mxu0 %v268_v3  ;;  %v235_v11 = vpack.c.bf16 %v101_v10, %v100_v9  ;;  %v238_v14 = vpack.c.bf16 %v103_v13, %v102_v12  ;;  %s244_s30 = scalar_lea.vmem %s187_s29, 128  ;;  %p249_p1 = scmp.lt.s32.totalorder %s187_s29, %s187_s29 }
   0x6   :  { %p245_p0 = scmp.ne.s32.totalorder %s187_s29, %s244_s30  ;;  %p250_p2 = scmp.lt.s32.totalorder %s244_s30, %s244_s30 }
   0x7   :  { %236 = vmatpush3.bf16.msra.mxu1 %v235_v11 }
   0x8   :  { %233 = vmatpush3.bf16.msra.mxu0 %v232_v7  ;;  %237 = vmatprep.subr.bf16.mxu1 %v268_v3  ;;  %p251_p3 = por %p250_p2, %p249_p1 }
   0xa   :  { %p252_p4 = pnand %p251_p3, %p245_p0 }
   0xb   :  { %215 = vmatmul.mubr.msk.f32.vlgmr.msra.gmra.mrb[0].mxu0 %vm24_vm1, %v19_v8  ;;  %239 = vmatpush3.bf16.msra.mxu1 %v238_v14 }
  0xde   :  { %v94_v15 = vpop.f32.mrb[0].mxu0 }
  0xdf   :  { %98 = vst.msk [vmem:[#allocation2] sm:$0xff] %vm24_vm1, %v94_v15  ;;  %v216_v16 = vpop.f32.mrb[1].mxu0 }
  0xe6   :  { %v99_v17 = vld [vmem:[#allocation2] sm:$0xff] }
  0xe7   :  { %226 = vmatmul.mubr.msk.f32.vlgmr.msra.gmra.mrb[0].mxu1 %vm24_vm1, %v99_v17 }
 0x1ba   :  { %v174_v18 = vpop.f32.mrb[0].mxu1 }
 0x1bb   :  { %179 = vst.msk [vmem:[#allocation3] sm:$0xff] %vm178_vm2, %v174_v18  ;;  %v227_v19 = vpop.f32.mrb[1].mxu1 }
 0x1bc   :  { %255 = shalt.err (!%p252_p4)
}
 0x1bd   :  { %s256_s5 = scalar_lea.hbm %s334_s3, 128 }
 0x1be   :  { %p257_p5 = scmp.ne.s32.totalorder %s334_s3, %s256_s5  ;;  %p260_p6 = scmp.lt.u32.totalorder %s256_s5, %s334_s3 }
 0x1c0   :  { %p262_p7 = pnand %p260_p6, %p257_p5 }
 0x1c2   :  { %265 = shalt.err (!%p262_p7)
}
 0x1c3   :  { %189 = dma.vmem_to_hbm [thread:$0]  %s187_s29, 128, %s334_s3, [#allocation4]  }
 0x1c4   :  { %266 = dma.done.wait [#allocation4], 128  }
 0x1c5   :  { %267 = vsyncadd [#allocation4], 4294967168 }
 0x1c6   :  { %193 = vsyncpa [#allocation4], 1 }

</bundles_post_ra>
